<compile_context>
chip_gen: v7x
topology: tpu7x:2x2x1
jax: 0.10.0
libtpu: 0.0.40
codegen_flags: <defaults>
</compile_context>

<pallas_src>
import jax
import jax.numpy as jnp
from jax.experimental import pallas as pl
from jax.experimental.pallas import tpu as pltpu

N_H1 = 128
N_H2 = 64


# --------------------------------------------------------------------------- helpers
def _round_up(x: int, m: int) -> int:
    return ((int(x) + m - 1) // m) * m


def _device_kind() -> str:
    try:
        return jax.devices()[0].device_kind.lower()
    except Exception:
        return ""


def _vmem_plan():
    """Returns (per-step working-set budget bytes, vmem_limit_bytes, TCs/chip)."""
    kind = _device_kind()
    if "v7" in kind:
        # 64 MiB physical VMEM per TC, 2 TCs per chip -> keep the working set small.
        return 24 << 20, 48 << 20, 2
    if "v5 lite" in kind or "v5e" in kind:
        # 128 MiB physical but only 16 MiB default scoped limit -> raise it.
        return 40 << 20, 64 << 20, 1
    # v6e / v4 / unknown: 128 MiB physical, 32 MiB default scoped limit.
    return 48 << 20, 80 << 20, 1


def _default_epilogue_dtype():
    """bf16 epilogue only where the VPU has bf16 VALUs (v6e / v7x)."""
    kind = _device_kind()
    if "v6" in kind or "v7" in kind:
        return jnp.bfloat16
    return jnp.float32


def _choose_tile(batch: int, d_in: int, vmem_budget: int):
    """Pick batch-tile TM (lane width) and padded batch from a VMEM budget."""
    in_bufs = 3  # budget for a triple-buffered bf16 x^T stream
    # Per batch-column bytes: x^T buffers + fc1 f32 acc + bf16 h1 + fc2 f32
    # acc/h2 + output buffers (rounded up generously).
    per_col = in_bufs * 2 * d_in + 1536
    resident = 2 * (N_H1 * d_in + N_H2 * N_H1) + 4096  # bf16 weights + biases
    tm_cap = max(vmem_budget - resident, 0) // per_col
    tm_cap = max(128, min(8192, (tm_cap // 128) * 128))

    if batch <= 1024:
        # 1-2 tiles; lane dimension a multiple of 128.
        tiles = 1 if batch <= 256 else 2
        tm = _round_up(pl.cdiv(batch, tiles), 128)
    else:
        # Target >= 4 tiles (pipelining + dual-TC chips), even count, TM a
        # multiple of 512 to amortize the ~0.35 us per-grid-step overhead.
        tiles = max(4, pl.cdiv(batch, tm_cap))
        tiles += tiles % 2
        tm = _round_up(pl.cdiv(batch, tiles), 512)

    tm = max(128, min(tm, tm_cap))
    padded = _round_up(batch, tm)
    return tm, padded


# --------------------------------------------------------------------------- kernel
def mlp_kernel(xt_ref, w1_ref, b1_ref, w2_ref, b2_ref, w3_ref, b3_ref, o_ref):
    # xt_ref: (D, TM) bf16          w1_ref: (128, D) bf16
    # b1_ref: (128, 1) f32|bf16     w2_ref: (64, 128) bf16   b2_ref: (64, 1) f32
    # w3_ref: (64, 1) f32           b3_ref: (1, 1) f32 in SMEM
    # o_ref : (1, TM) f32 (lane-dense output row)
    xt = xt_ref[...]

    # fc1: MXU matmul (bf16 operands, f32 accumulation).  The bias + ReLU
    # epilogue runs in b1's dtype: bf16 on v6e/v7x (halves VALU + vld/vst work
    # on the biggest intermediate and merges with the cast fc2 needs), f32 on
    # v5e.  dropout1 = identity in eval mode.
    a1 = jnp.dot(w1_ref[...], xt, preferred_element_type=jnp.float32)        # (128, TM)
    h1 = jnp.maximum(a1.astype(b1_ref.dtype) + b1_ref[...], 0).astype(w2_ref.dtype)

    # fc2: MXU matmul, f32 bias + ReLU (kept f32: small (64, TM) tensor and the
    # fc3 reduce wants f32 anyway).  dropout2 = identity in eval mode.
    a2 = jnp.dot(w2_ref[...], h1, preferred_element_type=jnp.float32)        # (64, TM)
    h2 = jnp.maximum(a2 + b2_ref[...], 0.0)

    # fc3 (64 -> 1): per-lane multiply (VPU) + cross-sublane reduce (XLU);
    # result is already a lane-dense (1, TM) row.  b3 is an SMEM scalar.
    out = jnp.sum(h2 * w3_ref[...], axis=0, keepdims=True) + b3_ref[0, 0]    # (1, TM)
    o_ref[...] = out.astype(o_ref.dtype)


# --------------------------------------------------------------------------- wrapper
def neural_network_forward(x, params, *, mxu_dtype=jnp.bfloat16,
                           epilogue_dtype=None, x_feature_major=False):
    """Forward pass.

    x: (batch, input_dim) f32, or (input_dim, batch) if x_feature_major=True
       (lets callers that keep activations feature-major skip the XLA transpose).
    Returns (batch, 1) f32.
    """
    w1, b1, w2, b2, w3, b3 = params
    if epilogue_dtype is None:
        epilogue_dtype = _default_epilogue_dtype()

    if x_feature_major:
        d_in, batch = x.shape
        xt = x.astype(mxu_dtype)
    else:
        batch, d_in = x.shape
        # Cast BEFORE transposing so the transposed write is bf16, not f32.
        xt = x.astype(mxu_dtype).T                       # (d_in, batch)

    vmem_budget, vmem_limit, n_cores = _vmem_plan()
    tm, padded_b = _choose_tile(int(batch), int(d_in), vmem_budget)
    steps = padded_b // tm

    if padded_b != batch:
        xt = jnp.pad(xt, ((0, 0), (0, padded_b - batch)))  # zero-pad tail tile

    w1c = w1.astype(mxu_dtype)
    w2c = w2.astype(mxu_dtype)
    b1c = b1.astype(epilogue_dtype)
    b2c = b2.astype(jnp.float32)
    w3c = w3.astype(jnp.float32)
    b3c = b3.reshape(1, 1).astype(jnp.float32)

    # Pipelined x^T stream; deepen to 3 buffers only when the grid is long
    # enough for it to matter (cheap VMEM-wise, hides DMA jitter).
    if steps >= 4:
        xt_spec = pl.BlockSpec((d_in, tm), lambda i: (0, i),
                               pipeline_mode=pl.Buffered(3))
    else:
        xt_spec = pl.BlockSpec((d_in, tm), lambda i: (0, i))

    # Split batch tiles across both TensorCores on 2-TC chips (v7x); otherwise
    # plain "parallel" (near-zero difference vs "arbitrary" on 1-TC chips).
    if n_cores >= 2 and steps >= 2 and steps % n_cores == 0:
        dim_sem = (pltpu.CORE_PARALLEL,)
    else:
        dim_sem = ("parallel",)

    flops = 2 * padded_b * (d_in * N_H1 + N_H1 * N_H2 + N_H2)
    bytes_accessed = (
        padded_b * d_in * 2                               # bf16 activations in
        + padded_b * 4                                    # lane-dense f32 output
        + (N_H1 * d_in + N_H2 * N_H1) * 2                 # bf16 weights
        + (N_H1 + N_H2 + N_H2 + 1) * 4                    # biases + w3
    )

    out_padded = pl.pallas_call(
        mlp_kernel,
        out_shape=jax.ShapeDtypeStruct((1, padded_b), jnp.float32),
        grid=(steps,),
        in_specs=[
            xt_spec,                                           # x^T tile (pipelined)
            pl.BlockSpec((N_H1, d_in), lambda i: (0, 0)),      # w1: VMEM-resident
            pl.BlockSpec((N_H1, 1), lambda i: (0, 0)),         # b1
            pl.BlockSpec((N_H2, N_H1), lambda i: (0, 0)),      # w2
            pl.BlockSpec((N_H2, 1), lambda i: (0, 0)),         # b2
            pl.BlockSpec((N_H2, 1), lambda i: (0, 0)),         # w3 (column)
            pl.BlockSpec(memory_space=pltpu.MemorySpace.SMEM), # b3 scalar (1,1)
        ],
        out_specs=pl.BlockSpec((1, tm), lambda i: (0, i)),     # lane-dense row
        compiler_params=pltpu.CompilerParams(
            dimension_semantics=dim_sem,
            vmem_limit_bytes=vmem_limit,
        ),
        cost_estimate=pl.CostEstimate(
            flops=flops, transcendentals=0, bytes_accessed=bytes_accessed),
    )(xt, w1c, b1c, w2c, b2c, w3c, b3c)

    return out_padded[0, :batch].reshape(batch, 1)


# --------------------------------------------------------------------------- params / reference
def init_params(key, input_dim):
    """PyTorch-Linear-style init, weights in torch's (out_features, in_features)
    layout.  Biases / fc3 weight stored as columns so they lane-broadcast."""
    def linear(k, fan_in, fan_out):
        kw, kb = jax.random.split(k)
        bound = 1.0 / jnp.sqrt(fan_in)
        w = jax.random.uniform(kw, (fan_out, fan_in), jnp.float32, -bound, bound)
        b = jax.random.uniform(kb, (fan_out, 1), jnp.float32, -bound, bound)
        return w, b

    k1, k2, k3 = jax.random.split(key, 3)
    w1, b1 = linear(k1, input_dim, N_H1)
    w2, b2 = linear(k2, N_H1, N_H2)
    w3_row, b3 = linear(k3, N_H2, 1)            # (1, 64), (1, 1)
    w3 = w3_row.reshape(N_H2, 1)                # column for the VPU/XLU fc3 path
    return w1, b1, w2, b2, w3, b3


def reference_forward(x, params, mxu_dtype=jnp.bfloat16, epilogue_dtype=jnp.float32):
    """Plain-JAX reference applying the same casts as the kernel."""
    w1, b1, w2, b2, w3, b3 = params
    xb = x.astype(mxu_dtype)
    a1 = jnp.dot(xb, w1.astype(mxu_dtype).T, preferred_element_type=jnp.float32)
    h1 = jnp.maximum(a1.astype(epilogue_dtype)
                     + b1.reshape(1, -1).astype(epilogue_dtype), 0).astype(mxu_dtype)
    a2 = jnp.dot(h1, w2.astype(mxu_dtype).T, preferred_element_type=jnp.float32)
    h2 = jnp.maximum(a2 + b2.reshape(1, -1), 0.0)
    return (h2 @ w3 + b3.reshape(1, 1)).astype(jnp.float32)   # (batch, 1)


# --------------------------------------------------------------------------- test
if __name__ == "__main__":
    # TODO(synk): training-mode dropout (p=0.2) is not implemented; forward
    # matches the module in eval mode where Dropout is the identity.
    key = jax.random.PRNGKey(0)
    ep_dtype = _default_epilogue_dtype()

    # (batch, input_dim): tiny case + a 2-tile case with a padded tail.
    cases = [(8, 32), (600, 64)]
    for idx, (batch, d_in) in enumerate(cases):
        k_x, k_p = jax.random.split(jax.random.fold_in(key, idx))
        x = jax.random.normal(k_x, (batch, d_in), dtype=jnp.float32)
        params = init_params(k_p, d_in)

        out = neural_network_forward(x, params, epilogue_dtype=ep_dtype)
        out = jax.block_until_ready(out)

        ref = reference_forward(x, params, epilogue_dtype=ep_dtype)
        assert out.shape == (batch, 1), (out.shape, batch)
        max_err = float(jnp.max(jnp.abs(out - ref)))
        assert jnp.allclose(out, ref, atol=5e-3, rtol=5e-3), (
            f"mismatch vs reference at batch={batch}, d_in={d_in}: {max_err}")

    print("KERNEL_OK")
</pallas_src>

<mosaic_0001>
module attributes {stable_mosaic.version = 11 : i64} {
  func.func @mlp_kernel(%arg0: i32, %arg1: memref<32x128xbf16, #tpu.memory_space<vmem>>, %arg2: memref<128x32xbf16, #tpu.memory_space<vmem>>, %arg3: memref<128x1xf32, #tpu.memory_space<vmem>>, %arg4: memref<64x128xbf16, #tpu.memory_space<vmem>>, %arg5: memref<64x1xf32, #tpu.memory_space<vmem>>, %arg6: memref<64x1xf32, #tpu.memory_space<vmem>>, %arg7: memref<1x1xf32, #tpu.memory_space<smem>>, %arg8: memref<1x128xf32, #tpu.memory_space<vmem>>) attributes {dimension_semantics = [#tpu.dimension_semantics<parallel>], iteration_bounds = array<i64: 1>, scalar_prefetch = 0 : i64, scratch_operands = 0 : i64, tpu.core_type = #tpu.core_type<tc>, window_params = [{transform_indices = @transform_0, window_bounds = array<i64: 32, 128>}, {pipeline_mode = #tpu.pipeline_mode<synchronous>, transform_indices = @transform_1, window_bounds = array<i64: 128, 32>}, {pipeline_mode = #tpu.pipeline_mode<synchronous>, transform_indices = @transform_2, window_bounds = array<i64: 128, 1>}, {pipeline_mode = #tpu.pipeline_mode<synchronous>, transform_indices = @transform_3, window_bounds = array<i64: 64, 128>}, {pipeline_mode = #tpu.pipeline_mode<synchronous>, transform_indices = @transform_4, window_bounds = array<i64: 64, 1>}, {pipeline_mode = #tpu.pipeline_mode<synchronous>, transform_indices = @transform_5, window_bounds = array<i64: 64, 1>}, {transform_indices = @transform_6, window_bounds = array<i64: 1, 1>}, {transform_indices = @transform_7, window_bounds = array<i64: 1, 128>}]} {
    %c0 = arith.constant 0 : index
    %c0_0 = arith.constant 0 : index
    %0 = vector.load %arg1[%c0, %c0_0] : memref<32x128xbf16, #tpu.memory_space<vmem>>, vector<32x128xbf16>
    %c0_1 = arith.constant 0 : index
    %c0_2 = arith.constant 0 : index
    %1 = vector.load %arg2[%c0_1, %c0_2] : memref<128x32xbf16, #tpu.memory_space<vmem>>, vector<128x32xbf16>
    %cst = arith.constant dense<0.000000e+00> : vector<128x128xf32>
    %2 = tpu.matmul %1, %0, %cst {dimension_numbers = #tpu.dot_dimension_numbers<[1], [0], [0], [1], [0, 0, 1, 1], [], []>} : vector<128x32xbf16>, vector<32x128xbf16>, vector<128x128xf32> -> vector<128x128xf32>
    %c0_3 = arith.constant 0 : index
    %c0_4 = arith.constant 0 : index
    %3 = vector.load %arg3[%c0_3, %c0_4] : memref<128x1xf32, #tpu.memory_space<vmem>>, vector<128x1xf32>
    %4 = vector.broadcast %3 : vector<128x1xf32> to vector<128x128xf32>
    %5 = arith.addf %2, %4 : vector<128x128xf32>
    %cst_5 = arith.constant 0.000000e+00 : f32
    %6 = vector.broadcast %cst_5 : f32 to vector<128x128xf32>
    %7 = arith.maximumf %5, %6 : vector<128x128xf32>
    %8 = arith.truncf %7 : vector<128x128xf32> to vector<128x128xbf16>
    %c0_6 = arith.constant 0 : index
    %c0_7 = arith.constant 0 : index
    %9 = vector.load %arg4[%c0_6, %c0_7] : memref<64x128xbf16, #tpu.memory_space<vmem>>, vector<64x128xbf16>
    %cst_8 = arith.constant dense<0.000000e+00> : vector<64x128xf32>
    %10 = tpu.matmul %9, %8, %cst_8 {dimension_numbers = #tpu.dot_dimension_numbers<[1], [0], [0], [1], [0, 0, 1, 1], [], []>} : vector<64x128xbf16>, vector<128x128xbf16>, vector<64x128xf32> -> vector<64x128xf32>
    %c0_9 = arith.constant 0 : index
    %c0_10 = arith.constant 0 : index
    %11 = vector.load %arg5[%c0_9, %c0_10] : memref<64x1xf32, #tpu.memory_space<vmem>>, vector<64x1xf32>
    %12 = vector.broadcast %11 : vector<64x1xf32> to vector<64x128xf32>
    %13 = arith.addf %10, %12 : vector<64x128xf32>
    %cst_11 = arith.constant 0.000000e+00 : f32
    %14 = vector.broadcast %cst_11 : f32 to vector<64x128xf32>
    %15 = arith.maximumf %13, %14 : vector<64x128xf32>
    %c0_12 = arith.constant 0 : index
    %c0_13 = arith.constant 0 : index
    %16 = vector.load %arg6[%c0_12, %c0_13] : memref<64x1xf32, #tpu.memory_space<vmem>>, vector<64x1xf32>
    %17 = vector.broadcast %16 : vector<64x1xf32> to vector<64x128xf32>
    %18 = arith.mulf %15, %17 : vector<64x128xf32>
    %cst_14 = arith.constant dense<0.000000e+00> : vector<128xf32>
    %19 = vector.multi_reduction <add>, %18, %cst_14 [0] : vector<64x128xf32> to vector<128xf32>
    %20 = vector.shape_cast %19 : vector<128xf32> to vector<1x128xf32>
    %c0_15 = arith.constant 0 : index
    %c0_16 = arith.constant 0 : index
    %21 = memref.load %arg7[%c0_15, %c0_16] : memref<1x1xf32, #tpu.memory_space<smem>>
    %22 = vector.broadcast %21 : f32 to vector<1x128xf32>
    %23 = arith.addf %20, %22 : vector<1x128xf32>
    %c0_17 = arith.constant 0 : index
    %c0_18 = arith.constant 0 : index
    %24 = vector.load %arg8[%c0_17, %c0_18] : memref<1x128xf32, #tpu.memory_space<vmem>>, vector<1x128xf32>
    tpu.vector_store %arg8[%c0_17, %c0_18], %23 {strides = array<i32>} : memref<1x128xf32, #tpu.memory_space<vmem>>, vector<1x128xf32>,
    return
  }
  func.func @transform_0(%arg0: i32) -> (i32, i32) {
    %c0_i32 = arith.constant 0 : i32
    %c0_i32_0 = arith.constant 0 : i32
    return %c0_i32, %arg0 : i32, i32
  }
  func.func @transform_1(%arg0: i32) -> (i32, i32) {
    %c0_i32 = arith.constant 0 : i32
    %c0_i32_0 = arith.constant 0 : i32
    %c0_i32_1 = arith.constant 0 : i32
    return %c0_i32, %c0_i32_0 : i32, i32
  }
  func.func @transform_2(%arg0: i32) -> (i32, i32) {
    %c0_i32 = arith.constant 0 : i32
    %c0_i32_0 = arith.constant 0 : i32
    %c0_i32_1 = arith.constant 0 : i32
    return %c0_i32, %c0_i32_0 : i32, i32
  }
  func.func @transform_3(%arg0: i32) -> (i32, i32) {
    %c0_i32 = arith.constant 0 : i32
    %c0_i32_0 = arith.constant 0 : i32
    %c0_i32_1 = arith.constant 0 : i32
    return %c0_i32, %c0_i32_0 : i32, i32
  }
  func.func @transform_4(%arg0: i32) -> (i32, i32) {
    %c0_i32 = arith.constant 0 : i32
    %c0_i32_0 = arith.constant 0 : i32
    %c0_i32_1 = arith.constant 0 : i32
    return %c0_i32, %c0_i32_0 : i32, i32
  }
  func.func @transform_5(%arg0: i32) -> (i32, i32) {
    %c0_i32 = arith.constant 0 : i32
    %c0_i32_0 = arith.constant 0 : i32
    %c0_i32_1 = arith.constant 0 : i32
    return %c0_i32, %c0_i32_0 : i32, i32
  }
  func.func @transform_6(%arg0: i32) -> (i32, i32) {
    %c0_i32 = arith.constant 0 : i32
    %c0_i32_0 = arith.constant 0 : i32
    %c0_i32_1 = arith.constant 0 : i32
    return %c0_i32, %c0_i32_0 : i32, i32
  }
  func.func @transform_7(%arg0: i32) -> (i32, i32) {
    %c0_i32 = arith.constant 0 : i32
    %c0_i32_0 = arith.constant 0 : i32
    return %c0_i32, %arg0 : i32, i32
  }
}

</mosaic_0001>

<bundles_post_ra>
// kernel: tpu_custom_call.1
= control target key start
LH: loop header
LB: loop body
LE: loop exit
PB: predicated region body
PF: predicated region fallthrough
CT: control target
= control target key end

     0   :  { %13 = vsyncpa [#allocation4], 0  ;;  %s1135_s0 = inlined_call_operand.hbm [shape: bf16[32,128], index: 0, kind: input, shape index: {}]   ;;  %s1136_s1 = inlined_call_operand.hbm [shape: bf16[128,32], index: 1, kind: input, shape index: {}]   ;;  %s1137_s2 = inlined_call_operand.hbm [shape: f32[128,1], index: 2, kind: input, shape index: {}]   ;;  %s1138_s3 = inlined_call_operand.hbm [shape: bf16[64,128], index: 3, kind: input, shape index: {}]   ;;  %s1139_s4 = inlined_call_operand.hbm [shape: f32[64,1], index: 4, kind: input, shape index: {}]   ;;  %s1140_s5 = inlined_call_operand.hbm [shape: f32[64,1], index: 5, kind: input, shape index: {}]   ;;  %s1141_s6 = inlined_call_operand.<no memory space> [shape: f32[1,1], index: 6, kind: input, shape index: {}]   ;;  %s1142_s7 = inlined_call_operand.hbm [shape: f32[1,128], index: 7, kind: output, shape index: {}]  }
   0x1   :  { %14 = vsyncpa [#allocation7], 0 }
   0x2   :  { %15 = vsyncpa [#allocation10], 0 }
   0x3   :  { %16 = vsyncpa [#allocation13], 0 }
   0x4   :  { %17 = vsyncpa [#allocation5], 0  ;;  %s949_s24 = smov [#allocation6]   ;;  %s950_s26 = smov [#allocation9]  }
   0x5   :  { %s35_s25 = sshll.u32 %s949_s24, 4  ;;  %s59_s27 = sshll.u32 %s950_s26, 4  ;;  %s36_s25 = int_to_ptr.vmem [resolvable:$true] %s35_s25  ;;  %s1001_s27 = int_to_ptr.vmem [resolvable:$true] %s59_s27 }
   0x6   :  { %s785_s30 = scalar_lea.hbm %s1136_s1, 1024 }
   0x7   :  { %p786_p0 = scmp.ne.s32.totalorder %s1136_s1, %s785_s30  ;;  %p789_p1 = scmp.lt.u32.totalorder %s785_s30, %s1136_s1 }
   0x9   :  { %p791_p2 = pnand %p789_p1, %p786_p0 }
   0xb   :  { %794 = shalt.err (!%p791_p2)
}
   0xc   :  { %s795_s12 = scalar_lea.vmem %s36_s25, 1024  ;;  %p800_p4 = scmp.lt.s32.totalorder %s36_s25, %s36_s25 }
   0xd   :  { %p796_p3 = scmp.ne.s32.totalorder %s36_s25, %s795_s12  ;;  %p801_p5 = scmp.lt.s32.totalorder %s795_s12, %s795_s12 }
   0xf   :  { %p802_p6 = por %p801_p5, %p800_p4 }
  0x11   :  { %p803_p7 = pnand %p802_p6, %p796_p3 }
  0x13   :  { %806 = shalt.err (!%p803_p7)
}
  0x14   :  { %s951_s13 = smov 64   ;;  %s952_s14 = smov 4  }
  0x15   :  { %41 = dma.hbm_to_vmem [thread:$0]  %s1136_s1, 1024, %s36_s25, [#allocation7], %s951_s13, %s951_s13, %s952_s14  }
  0x16   :  { %s807_s19 = scalar_lea.hbm %s1138_s3, 512 }
  0x17   :  { %p808_p8 = scmp.ne.s32.totalorder %s1138_s3, %s807_s19  ;;  %p811_p9 = scmp.lt.u32.totalorder %s807_s19, %s1138_s3 }
  0x19   :  { %p813_p10 = pnand %p811_p9, %p808_p8 }
  0x1b   :  { %816 = shalt.err (!%p813_p10)
}
  0x1c   :  { %s817_s24 = scalar_lea.vmem %s1001_s27, 512  ;;  %p822_p12 = scmp.lt.s32.totalorder %s1001_s27, %s1001_s27 }
  0x1d   :  { %p818_p11 = scmp.ne.s32.totalorder %s1001_s27, %s817_s24  ;;  %p823_p13 = scmp.lt.s32.totalorder %s817_s24, %s817_s24 }
  0x1f   :  { %p824_p0 = por %p823_p13, %p822_p12 }
  0x21   :  { %p825_p1 = pnand %p824_p0, %p818_p11 }
  0x23   :  { %828 = shalt.err (!%p825_p1)
}
  0x24   :  { %65 = dma.hbm_to_vmem [thread:$0]  %s1138_s3, 512, %s1001_s27, [#allocation10], %s951_s13, %s951_s13, %s952_s14  }
  0x25   :  { %s953_s26 = smov [#allocation3]   ;;  %s954_s29 = smov [#allocation8]  }
  0x26   :  { %s23_s28 = sshll.u32 %s953_s26, 4  ;;  %s47_s30 = sshll.u32 %s954_s29, 4  ;;  %s24_s28 = int_to_ptr.vmem [resolvable:$true] %s23_s28  ;;  %s1038_s30 = int_to_ptr.vmem [resolvable:$true] %s47_s30 }
  0x27   :  { %s829_s10 = scalar_lea.hbm %s1135_s0, 256 }
  0x28   :  { %p830_p2 = scmp.ne.s32.totalorder %s1135_s0, %s829_s10  ;;  %p833_p3 = scmp.lt.u32.totalorder %s829_s10, %s1135_s0 }
  0x2a   :  { %p835_p4 = pnand %p833_p3, %p830_p2 }
  0x2c   :  { %838 = shalt.err (!%p835_p4)
}
  0x2d   :  { %s839_s3 = scalar_lea.vmem %s24_s28, 256  ;;  %p844_p6 = scmp.lt.s32.totalorder %s24_s28, %s24_s28 }
  0x2e   :  { %p840_p5 = scmp.ne.s32.totalorder %s24_s28, %s839_s3  ;;  %p845_p7 = scmp.lt.s32.totalorder %s839_s3, %s839_s3 }
  0x30   :  { %p846_p8 = por %p845_p7, %p844_p6 }
  0x32   :  { %p847_p9 = pnand %p846_p8, %p840_p5 }
  0x34   :  { %850 = shalt.err (!%p847_p9)
}
  0x35   :  { %29 = dma.hbm_to_vmem [thread:$0]  %s1135_s0, 256, %s24_s28, [#allocation4], %s951_s13, %s951_s13, %s952_s14  }
  0x36   :  { %s851_s20 = scalar_lea.hbm %s1137_s2, 2048 }
  0x37   :  { %p852_p10 = scmp.ne.s32.totalorder %s1137_s2, %s851_s20  ;;  %p855_p11 = scmp.lt.u32.totalorder %s851_s20, %s1137_s2 }
  0x39   :  { %p857_p12 = pnand %p855_p11, %p852_p10 }
  0x3b   :  { %860 = shalt.err (!%p857_p12)
}
  0x3c   :  { %s861_s1 = scalar_lea.vmem %s1038_s30, 2048  ;;  %p866_p0 = scmp.lt.s32.totalorder %s1038_s30, %s1038_s30 }
  0x3d   :  { %p862_p13 = scmp.ne.s32.totalorder %s1038_s30, %s861_s1  ;;  %p867_p1 = scmp.lt.s32.totalorder %s861_s1, %s861_s1 }
  0x3f   :  { %p868_p2 = por %p867_p1, %p866_p0 }
  0x41   :  { %p869_p3 = pnand %p868_p2, %p862_p13 }
  0x43   :  { %872 = shalt.err (!%p869_p3)
}
  0x44   :  { %s955_s0 = smov 128   ;;  %s956_s13 = smov 8  }
  0x45   :  { %53 = dma.hbm_to_vmem [thread:$0]  %s1137_s2, 2048, %s1038_s30, [#allocation7], %s955_s0, %s955_s0, %s956_s13  }
  0x46   :  { %s957_s26 = smov [#allocation11]   ;;  %s958_s29 = smov [#allocation12]  }
  0x47   :  { %s71_s28 = sshll.u32 %s957_s26, 4  ;;  %s83_s8 = sshll.u32 %s958_s29, 4  ;;  %s72_s28 = int_to_ptr.vmem [resolvable:$true] %s71_s28  ;;  %s1075_s8 = int_to_ptr.vmem [resolvable:$true] %s83_s8 }
  0x48   :  { %s873_s11 = scalar_lea.hbm %s1139_s4, 1024 }
  0x49   :  { %p874_p4 = scmp.ne.s32.totalorder %s1139_s4, %s873_s11  ;;  %p877_p5 = scmp.lt.u32.totalorder %s873_s11, %s1139_s4 }
  0x4b   :  { %p879_p6 = pnand %p877_p5, %p874_p4 }
  0x4d   :  { %882 = shalt.err (!%p879_p6)
}
  0x4e   :  { %s883_s2 = scalar_lea.vmem %s72_s28, 1024  ;;  %p888_p8 = scmp.lt.s32.totalorder %s72_s28, %s72_s28 }
  0x4f   :  { %p884_p7 = scmp.ne.s32.totalorder %s72_s28, %s883_s2  ;;  %p889_p9 = scmp.lt.s32.totalorder %s883_s2, %s883_s2 }
  0x51   :  { %p890_p10 = por %p889_p9, %p888_p8 }
  0x53   :  { %p891_p11 = pnand %p890_p10, %p884_p7 }
  0x55   :  { %894 = shalt.err (!%p891_p11)
}
  0x56   :  { %77 = dma.hbm_to_vmem [thread:$0]  %s1139_s4, 1024, %s72_s28, [#allocation10], %s955_s0, %s955_s0, %s956_s13  }
  0x57   :  { %s895_s19 = scalar_lea.hbm %s1140_s5, 1024 }
  0x58   :  { %p896_p12 = scmp.ne.s32.totalorder %s1140_s5, %s895_s19  ;;  %p899_p13 = scmp.lt.u32.totalorder %s895_s19, %s1140_s5 }
  0x5a   :  { %p901_p0 = pnand %p899_p13, %p896_p12 }
  0x5c   :  { %904 = shalt.err (!%p901_p0)
}
  0x5d   :  { %s905_s24 = scalar_lea.vmem %s1075_s8, 1024  ;;  %p910_p2 = scmp.lt.s32.totalorder %s1075_s8, %s1075_s8 }
  0x5e   :  { %p906_p1 = scmp.ne.s32.totalorder %s1075_s8, %s905_s24  ;;  %p911_p3 = scmp.lt.s32.totalorder %s905_s24, %s905_s24 }
  0x60   :  { %p912_p4 = por %p911_p3, %p910_p2 }
  0x62   :  { %p913_p5 = pnand %p912_p4, %p906_p1 }
  0x64   :  { %916 = shalt.err (!%p913_p5)
}
  0x65   :  { %89 = dma.hbm_to_vmem [thread:$0]  %s1140_s5, 1024, %s1075_s8, [#allocation13], %s955_s0, %s955_s0, %s956_s13  }
  0x66   :  { %939 = dma.done.wait [#allocation4], 256  }
  0x67   :  { %940 = vsyncadd [#allocation4], 4294967040 }
  0x68   :  { %941 = dma.done.wait [#allocation7], 3072  }
  0x69   :  { %942 = vsyncadd [#allocation7], 4294964224 }
  0x6a   :  { %943 = dma.done.wait [#allocation10], 1536  }
  0x6b   :  { %944 = vsyncadd [#allocation10], 4294965760 }
  0x6c   :  { %945 = dma.done.wait [#allocation13], 1024  }
  0x6d   :  { %946 = vsyncadd [#allocation13], 4294966272  ;;  %v959_v0 = vmov 0   ;;  %v771_v1 = vld [vmem:[#allocation3] sm:$0xff]   ;;  %v772_v2 = vld [vmem:[#allocation3 + $0x8] sm:$0xff]   ;;  %vm279_vm0 = vcmask 261120  }
  0x6e   :  { %769 = vset.pattern.permute.xlu0 %v959_v0  ;;  %770 = vset.pattern.permute.xlu1 %v959_v0  ;;  %v773_v3 = vld [vmem:[#allocation6] sm:$0xff]   ;;  %v774_v4 = vld [vmem:[#allocation6 + $0x8] sm:$0xff]   ;;  %v775_v5 = vld [vmem:[#allocation6 + $0x10] sm:$0xff]   ;;  %s960_s13 = smov [#allocation14]  }
  0x6f   :  { %713 = vmatprep.subr.bf16.mxu0 %v771_v1  ;;  %717 = vmatprep.mubr.msk.bf16.mxu0 %vm279_vm0, %v773_v3  ;;  %v131_v6 = vld [vmem:[#allocation8] sm:$0xff]  ;;  %v133_v7 = vld [vmem:[#allocation8 + $0x10] sm:$0xff]  ;;  %v132_v8 = vld [vmem:[#allocation8 + $0x8] sm:$0xff]  ;;  %s657_s14 = sshll.u32 %s960_s13, 4  ;;  %s658_s14 = int_to_ptr.vmem [resolvable:$true] %s657_s14 }
  0x70   :  { %714 = vmatpush3.bf16.msra.mxu0 %v771_v1  ;;  %149 = vperm.xlu0 %769, %v131_v6   ;;  %v134_v9 = vld [vmem:[#allocation8 + $0x18] sm:$0xff]  ;;  %v135_v11 = vld [vmem:[#allocation8 + $0x20] sm:$0xff]  ;;  %v136_v13 = vld [vmem:[#allocation8 + $0x28] sm:$0xff]  ;;  %s917_s25 = scalar_lea.vmem %s658_s14, 16  ;;  %s921_s26 = scalar_lea.vmem %s658_s14, 32 }
  0x71   :  { %715 = vmatprep.subr.bf16.mxu0 %v772_v2  ;;  %159 = vperm.xlu1 %770, %v133_v7   ;;  %v776_v10 = vld [vmem:[#allocation6 + $0x18] sm:$0xff]   ;;  %v777_v12 = vld [vmem:[#allocation6 + $0x20] sm:$0xff]   ;;  %v137_v14 = vld [vmem:[#allocation8 + $0x30] sm:$0xff]  ;;  %p918_p6 = scmp.ne.s32.totalorder %s658_s14, %s917_s25  ;;  %p922_p7 = scmp.lt.s32.totalorder %s658_s14, %s658_s14 }
  0x72   :  { %v778_v15 = vld [vmem:[#allocation6 + $0x28] sm:$0xff]   ;;  %v138_v16 = vld [vmem:[#allocation8 + $0x38] sm:$0xff]  ;;  %v139_v17 = vld [vmem:[#allocation8 + $0x40] sm:$0xff]  ;;  %p923_p8 = scmp.lt.s32.totalorder %s921_s26, %s917_s25 }
  0x73   :  { %v779_v18 = vld [vmem:[#allocation6 + $0x30] sm:$0xff]   ;;  %v140_v19 = vld [vmem:[#allocation8 + $0x48] sm:$0xff]  ;;  %v142_v21 = vld [vmem:[#allocation8 + $0x58] sm:$0xff] }
  0x74   :  { %716 = vmatpush3.bf16.msra.mxu0 %v772_v2  ;;  %154 = vperm.xlu0 %769, %v132_v8   ;;  %v141_v20 = vld [vmem:[#allocation8 + $0x50] sm:$0xff]  ;;  %v780_v22 = vld [vmem:[#allocation6 + $0x38] sm:$0xff]   ;;  %v143_v23 = vld [vmem:[#allocation8 + $0x60] sm:$0xff]  ;;  %p924_p9 = por %p923_p8, %p922_p7 }
  0x75   :  { %164 = vperm.xlu1 %770, %v134_v9   ;;  %v144_v24 = vld [vmem:[#allocation8 + $0x68] sm:$0xff]  ;;  %v145_v25 = vld [vmem:[#allocation8 + $0x70] sm:$0xff]  ;;  %v146_v26 = vld [vmem:[#allocation8 + $0x78] sm:$0xff] }
  0x76   :  { %v433_v27 = vld [vmem:[#allocation11] sm:$0xff]  ;;  %v434_v28 = vld [vmem:[#allocation11 + $0x8] sm:$0xff]  ;;  %v435_v29 = vld [vmem:[#allocation11 + $0x10] sm:$0xff]  ;;  %p925_p10 = pnand %p924_p9, %p918_p6 }
  0x77   :  { %718 = vmatmul.mubr.msk.bf16.vlgmr.msra.gmra.mrb[0].mxu0 %vm279_vm0, %v774_v4  ;;  %v436_v30 = vld [vmem:[#allocation11 + $0x18] sm:$0xff]  ;;  %v578_v31 = vld [vmem:[#allocation12] sm:$0xff]  ;;  %v579_v32 = vld [vmem:[#allocation12 + $0x8] sm:$0xff] }
  0x78   :  { %721 = vmatprep.mubr.msk.bf16.mxu0 %vm279_vm0, %v775_v5  ;;  %169 = vperm.xlu0 %769, %v135_v11   ;;  %v437_v33 = vld [vmem:[#allocation11 + $0x20] sm:$0xff]  ;;  %v580_v34 = vld [vmem:[#allocation12 + $0x10] sm:$0xff]  ;;  %v438_v35 = vld [vmem:[#allocation11 + $0x28] sm:$0xff] }
  0x79   :  { %174 = vperm.xlu1 %770, %v136_v13   ;;  %v581_v36 = vld [vmem:[#allocation12 + $0x18] sm:$0xff]  ;;  %v439_v37 = vld [vmem:[#allocation11 + $0x30] sm:$0xff]  ;;  %v582_v38 = vld [vmem:[#allocation12 + $0x20] sm:$0xff] }
  0x7a   :  { %v440_v39 = vld [vmem:[#allocation11 + $0x38] sm:$0xff]  ;;  %v583_v40 = vld [vmem:[#allocation12 + $0x28] sm:$0xff]  ;;  %v584_v41 = vld [vmem:[#allocation12 + $0x30] sm:$0xff] }
  0x7b   :  { %v585_v42 = vld [vmem:[#allocation12 + $0x38] sm:$0xff]  ;;  %v781_v43 = vld [vmem:[#allocation9] sm:$0xff]  }
  0x7c   :  { %179 = vperm.xlu0 %769, %v137_v14   ;;  %749 = vmatprep.mubr.bf16.mxu1 %v781_v43 }
  0x7d   :  { %184 = vperm.xlu1 %770, %v138_v16  }
  0x7f   :  { %722 = vmatmul.mubr.msk.bf16.gmra.mrb[4].mxu0 %vm279_vm0, %v776_v10 }
  0x80   :  { %725 = vmatprep.mubr.msk.bf16.mxu0 %vm279_vm0, %v777_v12  ;;  %189 = vperm.xlu0 %769, %v139_v17  }
  0x81   :  { %194 = vperm.xlu1 %770, %v140_v19  }
  0x84   :  { %199 = vperm.xlu0 %769, %v141_v20  }
  0x85   :  { %204 = vperm.xlu1 %770, %v142_v21  }
  0x87   :  { %726 = vmatmul.mubr.msk.bf16.gmra.mrb[8].mxu0 %vm279_vm0, %v778_v15 }
  0x88   :  { %729 = vmatprep.mubr.msk.bf16.mxu0 %vm279_vm0, %v779_v18  ;;  %209 = vperm.xlu0 %769, %v143_v23  }
  0x89   :  { %214 = vperm.xlu1 %770, %v144_v24  }
  0x8c   :  { %219 = vperm.xlu0 %769, %v145_v25  }
  0x8d   :  { %224 = vperm.xlu1 %770, %v146_v26  }
  0x8f   :  { %730 = vmatmul.mubr.msk.bf16.gmra.mrb[12].mxu0 %vm279_vm0, %v780_v22 }
  0x90   :  { %443 = vperm.xlu0 %769, %v433_v27  }
  0x91   :  { %448 = vperm.xlu1 %770, %v434_v28  }
  0x94   :  { %453 = vperm.xlu0 %769, %v435_v29  }
  0x95   :  { %458 = vperm.xlu1 %770, %v436_v30  }
  0x98   :  { %588 = vperm.xlu0 %769, %v578_v31  }
  0x99   :  { %593 = vperm.xlu1 %770, %v579_v32  }
  0x9c   :  { %463 = vperm.xlu0 %769, %v437_v33  }
  0x9d   :  { %598 = vperm.xlu1 %770, %v580_v34  }
  0xa0   :  { %468 = vperm.xlu0 %769, %v438_v35  }
  0xa1   :  { %603 = vperm.xlu1 %770, %v581_v36  }
  0xa4   :  { %473 = vperm.xlu0 %769, %v439_v37  }
  0xa5   :  { %608 = vperm.xlu1 %770, %v582_v38  }
  0xa8   :  { %478 = vperm.xlu0 %769, %v440_v39  }
  0xa9   :  { %613 = vperm.xlu1 %770, %v583_v40  }
  0xac   :  { %618 = vperm.xlu0 %769, %v584_v41  }
  0xad   :  { %623 = vperm.xlu1 %770, %v585_v42  }
  0xef   :  { %v150_v44 = vpop.permute.xlu0 %149 }
  0xf0   :  { %v160_v45 = vpop.permute.xlu1 %159 }
  0xf3   :  { %v155_v46 = vpop.permute.xlu0 %154 }
  0xf4   :  { %v165_v47 = vpop.permute.xlu1 %164 }
  0xf7   :  { %v170_v48 = vpop.permute.xlu0 %169 }
  0xf8   :  { %v175_v49 = vpop.permute.xlu1 %174 }
  0xfb   :  { %v180_v50 = vpop.permute.xlu0 %179 }
  0xfc   :  { %v185_v54 = vpop.permute.xlu1 %184 }
  0xff   :  { %v190_v62 = vpop.permute.xlu0 %189 }
 0x100   :  { %v195_v2 = vpop.permute.xlu1 %194 }
 0x103   :  { %v200_v11 = vpop.permute.xlu0 %199 }
 0x104   :  { %v205_v15 = vpop.permute.xlu1 %204 }
 0x107   :  { %v210_v23 = vpop.permute.xlu0 %209 }
 0x108   :  { %v215_v28 = vpop.permute.xlu1 %214 }
 0x10b   :  { %v220_v35 = vpop.permute.xlu0 %219 }
 0x10c   :  { %v225_v40 = vpop.permute.xlu1 %224 }
 0x14a   :  { %v719_v51 = vpop.f32.mrb[0].mxu0 }
 0x14b   :  { %v347_v52 = vadd.f32 %v719_v51, %v160_v45  ;;  %v338_v53 = vpop.f32.mrb[1].mxu0 }
 0x14c   :  { %v339_v55 = vadd.f32 %v338_v53, %v150_v44  ;;  %v720_v56 = vpop.f32.mrb[2].mxu0  ;;  %v783_v53 = vld [vmem:[#allocation9 + $0x10] sm:$0xff]  }
 0x14d   :  { %v350_v57 = vadd.f32 %v720_v56, %v165_v47  ;;  %v341_v58 = vpop.f32.mrb[3].mxu0  ;;  %v403_v60 = vmax.f32 %v347_v52, 0.0  ;;  %v782_v52 = vld [vmem:[#allocation9 + $0x8] sm:$0xff]   ;;  %v449_v56 = vpop.permute.xlu1 %448 }
 0x14e   :  { %v342_v59 = vadd.f32 %v341_v58, %v155_v46  ;;  %v401_v63 = vmax.f32 %v339_v55, 0.0  ;;  %v444_v55 = vpop.permute.xlu0 %443 }
 0x14f   :  { %v404_v61 = vmax.f32 %v350_v57, 0.0 }
 0x150   :  { %v402_v0 = vmax.f32 %v342_v59, 0.0 }
 0x151   :  { %v418_v1 = vpack.c.bf16 %v404_v61, %v403_v60  ;;  %v459_v58 = vpop.permute.xlu1 %458 }
 0x152   :  { %v723_v3 = vpop.f32.mrb[4].mxu0  ;;  %v417_v4 = vpack.c.bf16 %v402_v0, %v401_v63  ;;  %v454_v57 = vpop.permute.xlu0 %453 }
 0x153   :  { %v363_v5 = vadd.f32 %v723_v3, %v180_v50  ;;  %v354_v6 = vpop.f32.mrb[5].mxu0 }
 0x154   :  { %v355_v7 = vadd.f32 %v354_v6, %v170_v48  ;;  %v724_v8 = vpop.f32.mrb[6].mxu0  ;;  %733 = vmatprep.subr.bf16.mxu1 %v417_v4 }
 0x155   :  { %v366_v9 = vadd.f32 %v724_v8, %v185_v54  ;;  %v357_v10 = vpop.f32.mrb[7].mxu0  ;;  %734 = vmatpush3.bf16.msra.mxu1 %v417_v4  ;;  %v407_v13 = vmax.f32 %v363_v5, 0.0  ;;  %v784_v54 = vld [vmem:[#allocation9 + $0x18] sm:$0xff]   ;;  %v594_v60 = vpop.permute.xlu1 %593 }
 0x156   :  { %v358_v12 = vadd.f32 %v357_v10, %v175_v49  ;;  %735 = vmatprep.subr.bf16.mxu1 %v418_v1  ;;  %v405_v16 = vmax.f32 %v355_v7, 0.0  ;;  %v589_v59 = vpop.permute.xlu0 %588 }
 0x157   :  { %v408_v14 = vmax.f32 %v366_v9, 0.0 }
 0x158   :  { %v406_v17 = vmax.f32 %v358_v12, 0.0 }
 0x159   :  { %v420_v18 = vpack.c.bf16 %v408_v14, %v407_v13  ;;  %736 = vmatpush3.bf16.msra.mxu1 %v418_v1 }
 0x15a   :  { %v419_v19 = vpack.c.bf16 %v406_v17, %v405_v16  ;;  %v727_v20 = vpop.f32.mrb[8].mxu0  ;;  %v464_v61 = vpop.permute.xlu0 %463 }
 0x15b   :  { %v379_v21 = vadd.f32 %v727_v20, %v200_v11  ;;  %v370_v22 = vpop.f32.mrb[9].mxu0 }
 0x15c   :  { %v371_v24 = vadd.f32 %v370_v22, %v190_v62  ;;  %v728_v25 = vpop.f32.mrb[10].mxu0  ;;  %737 = vmatprep.subr.bf16.mxu1 %v419_v19  ;;  %v599_v62 = vpop.permute.xlu1 %598 }
 0x15d   :  { %v382_v26 = vadd.f32 %v728_v25, %v205_v15  ;;  %v373_v27 = vpop.f32.mrb[11].mxu0  ;;  %738 = vmatpush3.bf16.msra.mxu1 %v419_v19  ;;  %v411_v30 = vmax.f32 %v379_v21, 0.0 }
 0x15e   :  { %v374_v29 = vadd.f32 %v373_v27, %v195_v2  ;;  %739 = vmatprep.subr.bf16.mxu1 %v420_v18  ;;  %v409_v32 = vmax.f32 %v371_v24, 0.0  ;;  %v469_v63 = vpop.permute.xlu0 %468 }
 0x15f   :  { %v412_v31 = vmax.f32 %v382_v26, 0.0 }
 0x160   :  { %v410_v33 = vmax.f32 %v374_v29, 0.0  ;;  %v604_v1 = vpop.permute.xlu1 %603 }
 0x161   :  { %v422_v34 = vpack.c.bf16 %v412_v31, %v411_v30  ;;  %740 = vmatpush3.bf16.msra.mxu1 %v420_v18 }
 0x162   :  { %v421_v36 = vpack.c.bf16 %v410_v33, %v409_v32  ;;  %v731_v37 = vpop.f32.mrb[12].mxu0  ;;  %v474_v10 = vpop.permute.xlu0 %473 }
 0x163   :  { %v395_v38 = vadd.f32 %v731_v37, %v220_v35  ;;  %v386_v39 = vpop.f32.mrb[13].mxu0 }
 0x164   :  { %v387_v41 = vadd.f32 %v386_v39, %v210_v23  ;;  %v732_v42 = vpop.f32.mrb[14].mxu0  ;;  %741 = vmatprep.subr.bf16.mxu1 %v421_v36  ;;  %v609_v13 = vpop.permute.xlu1 %608 }
 0x165   :  { %v398_v43 = vadd.f32 %v732_v42, %v225_v40  ;;  %v389_v44 = vpop.f32.mrb[15].mxu0  ;;  %742 = vmatpush3.bf16.msra.mxu1 %v421_v36  ;;  %v415_v46 = vmax.f32 %v395_v38, 0.0 }
 0x166   :  { %v390_v45 = vadd.f32 %v389_v44, %v215_v28  ;;  %743 = vmatprep.subr.bf16.mxu1 %v422_v34  ;;  %v413_v48 = vmax.f32 %v387_v41, 0.0  ;;  %v479_v24 = vpop.permute.xlu0 %478 }
 0x167   :  { %v416_v47 = vmax.f32 %v398_v43, 0.0 }
 0x168   :  { %v414_v49 = vmax.f32 %v390_v45, 0.0  ;;  %v614_v31 = vpop.permute.xlu1 %613 }
 0x169   :  { %v424_v50 = vpack.c.bf16 %v416_v47, %v415_v46  ;;  %744 = vmatpush3.bf16.msra.mxu1 %v422_v34 }
 0x16a   :  { %v423_v51 = vpack.c.bf16 %v414_v49, %v413_v48  ;;  %v619_v39 = vpop.permute.xlu0 %618 }
 0x16c   :  { %745 = vmatprep.subr.bf16.mxu1 %v423_v51  ;;  %v624_v42 = vpop.permute.xlu1 %623 }
 0x16d   :  { %746 = vmatpush3.bf16.msra.mxu1 %v423_v51  ;;  %v648_v51 = vstv %s1141_s6 }
 0x16e   :  { %747 = vmatprep.subr.bf16.mxu1 %v424_v50 }
 0x171   :  { %748 = vmatpush3.bf16.msra.mxu1 %v424_v50 }
 0x174   :  { %750 = vmatmul.mubr.bf16.vlgmr.msra.gmra.mrb[0].mxu1 %v782_v52 }
 0x175   :  { %753 = vmatprep.mubr.bf16.mxu1 %v783_v53 }
 0x17c   :  { %754 = vmatmul.mubr.bf16.gmra.mrb[4].mxu1 %v784_v54 }
 0x247   :  { %v751_v0 = vpop.f32.mrb[0].mxu1 }
 0x248   :  { %v539_v2 = vpop.f32.mrb[1].mxu1  ;;  %v548_v3 = vadd.f32 %v751_v0, %v454_v57 }
 0x249   :  { %v540_v4 = vadd.f32 %v539_v2, %v444_v55  ;;  %v752_v5 = vpop.f32.mrb[2].mxu1 }
 0x24a   :  { %v551_v6 = vadd.f32 %v752_v5, %v459_v58  ;;  %v542_v7 = vpop.f32.mrb[3].mxu1  ;;  %v572_v11 = vmax.f32 %v548_v3, 0.0 }
 0x24b   :  { %v570_v8 = vmax.f32 %v540_v4, 0.0  ;;  %v543_v9 = vadd.f32 %v542_v7, %v449_v56 }
 0x24c   :  { %v573_v14 = vmax.f32 %v551_v6, 0.0  ;;  %v628_v19 = vmul.f32 %v599_v62, %v572_v11 }
 0x24d   :  { %v571_v12 = vmax.f32 %v543_v9, 0.0  ;;  %v626_v15 = vmul.f32 %v589_v59, %v570_v8 }
 0x24e   :  { %v629_v25 = vmul.f32 %v604_v1, %v573_v14 }
 0x24f   :  { %v627_v16 = vmul.f32 %v594_v60, %v571_v12  ;;  %v755_v17 = vpop.f32.mrb[4].mxu1 }
 0x250   :  { %v555_v18 = vpop.f32.mrb[5].mxu1  ;;  %v564_v21 = vadd.f32 %v755_v17, %v474_v10 }
 0x251   :  { %v634_v20 = vadd.f32 %v627_v16, %v626_v15  ;;  %v556_v22 = vadd.f32 %v555_v18, %v464_v61  ;;  %v756_v23 = vpop.f32.mrb[6].mxu1 }
 0x252   :  { %v558_v26 = vpop.f32.mrb[7].mxu1  ;;  %v567_v29 = vadd.f32 %v756_v23, %v479_v24  ;;  %v576_v32 = vmax.f32 %v564_v21, 0.0 }
 0x253   :  { %v635_v27 = vadd.f32 %v634_v20, %v628_v19  ;;  %v574_v28 = vmax.f32 %v556_v22, 0.0  ;;  %v559_v30 = vadd.f32 %v558_v26, %v469_v63 }
 0x254   :  { %v577_v37 = vmax.f32 %v567_v29, 0.0  ;;  %v632_v40 = vmul.f32 %v619_v39, %v576_v32 }
 0x255   :  { %v630_v33 = vmul.f32 %v609_v13, %v574_v28  ;;  %v636_v34 = vadd.f32 %v635_v27, %v629_v25  ;;  %v575_v35 = vmax.f32 %v559_v30, 0.0 }
 0x256   :  { %v633_v43 = vmul.f32 %v624_v42, %v577_v37 }
 0x257   :  { %v637_v36 = vadd.f32 %v636_v34, %v630_v33  ;;  %v631_v38 = vmul.f32 %v614_v31, %v575_v35 }
 0x259   :  { %v638_v41 = vadd.f32 %v637_v36, %v631_v38 }
 0x25b   :  { %v639_v44 = vadd.f32 %v638_v41, %v632_v40 }
 0x25d   :  { %v640_v45 = vadd.f32 %v639_v44, %v633_v43 }
 0x25f   :  { %v641_v46 = vrot.slane %v640_v45, 4 }
 0x261   :  { %v642_v47 = vadd.f32 %v641_v46, %v640_v45 }
 0x263   :  { %v643_v48 = vrot.slane %v642_v47, 2 }
 0x265   :  { %v644_v49 = vadd.f32 %v643_v48, %v642_v47 }
 0x267   :  { %v645_v50 = vrot.slane %v644_v49, 1 }
 0x269   :  { %v646_v52 = vadd.f32 %v645_v50, %v644_v49 }
 0x26b   :  { %v649_v53 = vadd.f32 %v648_v51, %v646_v52 }
 0x26d   :  { %650 = vst [vmem:[#allocation14] sm:$0x1] %v649_v53 }
 0x26e   :  { %928 = shalt.err (!%p925_p10)
}
 0x26f   :  { %s929_s8 = scalar_lea.hbm %s1142_s7, 16 }
 0x270   :  { %p930_p11 = scmp.ne.s32.totalorder %s1142_s7, %s929_s8  ;;  %p933_p12 = scmp.lt.u32.totalorder %s929_s8, %s1142_s7 }
 0x272   :  { %p935_p13 = pnand %p933_p12, %p930_p11 }
 0x274   :  { %938 = shalt.err (!%p935_p13)
}
 0x275   :  { %660 = dma.vmem_to_hbm [thread:$0]  %s658_s14, 16, %s1142_s7, [#allocation5]  }
 0x276   :  { %947 = dma.done.wait [#allocation5], 16  }
 0x277   :  { %948 = vsyncadd [#allocation5], 4294967280 }
 0x278   :  { %664 = vsyncpa [#allocation4], 1 }
 0x279   :  { %665 = vsyncpa [#allocation7], 1 }
 0x27a   :  { %666 = vsyncpa [#allocation10], 1 }
 0x27b   :  { %667 = vsyncpa [#allocation13], 1 }
 0x27c   :  { %668 = vsyncpa [#allocation5], 1 }

</bundles_post_ra>
